<compile_context>
chip_gen: v5e
topology: v5e:2x2
jax: 0.10.0
libtpu: 0.0.40
codegen_flags: <defaults>
</compile_context>

<pallas_src>
import jax
import jax.numpy as jnp
from jax.experimental import pallas as pl
from jax.experimental.pallas import tpu as pltpu

K = 5        # Conv1d kernel size
PAD = 2      # Conv1d padding


# ----------------------------- Pallas kernel --------------------------------
def up_double_conv_kernel(x2_ref, x1_ref, u_ref, w1a_ref, w1b_ref, c1_ref,
                          w2_ref, c2_ref, o_ref, x2buf, hbuf):
    # x2_ref : (1, C2, L)      skip connection (NCL, un-padded)
    # x1_ref : (1, C1, L1)     raw low-res path (NCL, un-upsampled)
    # u_ref  : (L1, L+4)       upsample+center-pad+conv-pad interpolation matrix
    # w1a_ref: (K, Cmid, C2)   conv1 taps for x2 channels, BN scale folded in
    # w1b_ref: (K, Cmid, C1)   conv1 taps for upsampled-x1 channels
    # c1_ref : (Cmid, 1)       folded conv1 bias + BN shift
    # w2_ref : (K, Cout, Cmid) conv2 taps, BN-folded
    # c2_ref : (Cout, 1)
    # o_ref  : (1, Cout, L)    NCL output
    # x2buf  : (C2, L+4)       VMEM scratch (time-padded x2)
    # hbuf   : (Cmid, L+4)     VMEM scratch (time-padded hidden activation)
    l = o_ref.shape[2]
    cmid = hbuf.shape[0]
    cout = o_ref.shape[1]

    # ---- upsample + centering pad + conv pad of x1, folded into one matmul ----
    x1p = jnp.dot(x1_ref[0], u_ref[...],
                  preferred_element_type=jnp.float32)            # (C1, L+4)

    # ---- conv time-pad of x2 realized in a tiny zeroed VMEM scratch ----
    x2buf[...] = jnp.zeros_like(x2buf)
    x2buf[:, PAD:PAD + l] = x2_ref[0]

    # ---- conv1 + folded BN + ReLU: 5-tap shifted-matmul accumulation ----
    # channel concat [x2, x1] is implicit: the conv1 weight is split along Cin.
    acc1 = jnp.zeros((cmid, l), jnp.float32)
    for k in range(K):
        acc1 = acc1 + jnp.dot(w1a_ref[k], x2buf[:, k:k + l],
                              preferred_element_type=jnp.float32)
        acc1 = acc1 + jnp.dot(w1b_ref[k], x1p[:, k:k + l],
                              preferred_element_type=jnp.float32)
    h = jnp.maximum(acc1 + c1_ref[...], 0.0)                     # (Cmid, L)

    # ---- re-pad the hidden activation through a small zeroed VMEM scratch ----
    hbuf[...] = jnp.zeros_like(hbuf)
    hbuf[:, PAD:PAD + l] = h

    # ---- conv2 + folded BN + ReLU ----
    acc2 = jnp.zeros((cout, l), jnp.float32)
    for k in range(K):
        acc2 = acc2 + jnp.dot(w2_ref[k], hbuf[:, k:k + l],
                              preferred_element_type=jnp.float32)
    o_ref[0] = jnp.maximum(acc2 + c2_ref[...], 0.0)


# ------------------------------- JAX glue ------------------------------------
def _build_upsample_pad_matrix(l_in, l_up, left, total_cols):
    """U (l_in, total_cols) s.t. x1 @ U == conv_pad(center_pad(upsample_x2(x1)))."""
    pos = jnp.arange(l_up, dtype=jnp.float32) * (l_in - 1) / (l_up - 1)
    lo = jnp.floor(pos).astype(jnp.int32)
    hi = jnp.minimum(lo + 1, l_in - 1)
    frac = pos - lo.astype(jnp.float32)
    rows = jnp.arange(l_in, dtype=jnp.int32)[:, None]
    w_up = ((rows == lo[None, :]).astype(jnp.float32) * (1.0 - frac)[None, :]
            + (rows == hi[None, :]).astype(jnp.float32) * frac[None, :])
    u = jnp.zeros((l_in, total_cols), jnp.float32)
    return u.at[:, PAD + left:PAD + left + l_up].set(w_up)


def prepare_params(w1_t, b1, g1, be1, m1, v1, w2_t, b2, g2, be2, m2, v2,
                   skip_channels, eps=1e-5):
    """PyTorch conv weights (Cout, Cin, K) + BN params -> per-tap (K, Cout, Cin)
    weights with BN scale folded in, split along Cin into [x2 part, x1 part],
    plus per-channel shifts shaped (C, 1) for lane-broadcast."""
    a1 = g1 / jnp.sqrt(v1 + eps)
    c1 = (b1 - m1) * a1 + be1
    w1 = jnp.transpose(w1_t * a1[:, None, None], (2, 0, 1))      # (K, Cmid, Cin)
    w1a = w1[:, :, :skip_channels]                               # taps for x2
    w1b = w1[:, :, skip_channels:]                               # taps for x1 (upsampled)
    a2 = g2 / jnp.sqrt(v2 + eps)
    c2 = (b2 - m2) * a2 + be2
    w2 = jnp.transpose(w2_t * a2[:, None, None], (2, 0, 1))      # (K, Cout, Cmid)
    return (w1a, w1b, c1.reshape(-1, 1), w2, c2.reshape(-1, 1))


def up_forward(x1, x2, params):
    """PyTorch `up.forward(x1, x2)`; x1: (N, C1, L1), x2: (N, C2, L2) in NCL.
    Returns (N, Cout, L2) in NCL."""
    w1a, w1b, c1, w2, c2 = params
    n, c1ch, l1 = x1.shape
    _, c2ch, l2 = x2.shape
    lup = 2 * l1
    diff = l2 - lup
    left = diff // 2
    lp = l2 + 2 * PAD
    u = _build_upsample_pad_matrix(l1, lup, left, lp)            # (L1, L2+4)
    cmid = w1a.shape[1]
    cout = w2.shape[1]

    return pl.pallas_call(
        up_double_conv_kernel,
        out_shape=jax.ShapeDtypeStruct((n, cout, l2), jnp.float32),
        grid_spec=pltpu.PrefetchScalarGridSpec(
            num_scalar_prefetch=0,
            grid=(n,),
            in_specs=[
                pl.BlockSpec((1, c2ch, l2), lambda i: (i, 0, 0)),
                pl.BlockSpec((1, c1ch, l1), lambda i: (i, 0, 0)),
                pl.BlockSpec((l1, lp), lambda i: (0, 0)),
                pl.BlockSpec((K, cmid, c2ch), lambda i: (0, 0, 0)),
                pl.BlockSpec((K, cmid, c1ch), lambda i: (0, 0, 0)),
                pl.BlockSpec((cmid, 1), lambda i: (0, 0)),
                pl.BlockSpec((K, cout, cmid), lambda i: (0, 0, 0)),
                pl.BlockSpec((cout, 1), lambda i: (0, 0)),
            ],
            out_specs=pl.BlockSpec((1, cout, l2), lambda i: (i, 0, 0)),
            scratch_shapes=[
                pltpu.VMEM((c2ch, lp), jnp.float32),
                pltpu.VMEM((cmid, lp), jnp.float32),
            ],
        ),
        compiler_params=pltpu.CompilerParams(
            dimension_semantics=("parallel",)),
    )(x2, x1, u, w1a, w1b, c1, w2, c2)


# --------------------------- pure-JAX reference -------------------------------
def upsample_linear_align_corners(x, scale=2):
    """x: (N, C, L) -> (N, C, scale*L); matches nn.Upsample(mode='linear',
    align_corners=True)."""
    n, c, l = x.shape
    lout = l * scale
    if l == 1:
        return jnp.broadcast_to(x, (n, c, lout))
    pos = jnp.arange(lout, dtype=jnp.float32) * (l - 1) / (lout - 1)
    lo = jnp.floor(pos).astype(jnp.int32)
    hi = jnp.minimum(lo + 1, l - 1)
    frac = pos - lo.astype(jnp.float32)
    return x[:, :, lo] * (1.0 - frac) + x[:, :, hi] * frac


def _conv1d_ref(x, w, b):
    y = jax.lax.conv_general_dilated(
        x, w, window_strides=(1,), padding=[(PAD, PAD)],
        dimension_numbers=('NCH', 'OIH', 'NCH'))
    return y + b[None, :, None]


def _bn_relu_ref(y, g, be, m, v, eps=1e-5):
    y = g[None, :, None] * (y - m[None, :, None]) / jnp.sqrt(v[None, :, None] + eps) \
        + be[None, :, None]
    return jnp.maximum(y, 0.0)


def double_conv_ref(x, w1t, b1, g1, be1, m1, v1, w2t, b2, g2, be2, m2, v2):
    y = _bn_relu_ref(_conv1d_ref(x, w1t, b1), g1, be1, m1, v1)
    return _bn_relu_ref(_conv1d_ref(y, w2t, b2), g2, be2, m2, v2)


# ----------------------------------- main -------------------------------------
if __name__ == "__main__":
    key = jax.random.PRNGKey(0)
    ks = jax.random.split(key, 16)

    N = 2
    in_channels, out_channels = 8, 4
    C1 = in_channels // 2        # channels of x1 (upsampled path)
    C2 = in_channels - C1        # channels of x2 (skip connection)
    L1, L2 = 7, 16               # upsample(7) -> 14, diff = 2 -> pad (1, 1)

    x1 = jax.random.normal(ks[0], (N, C1, L1), jnp.float32)
    x2 = jax.random.normal(ks[1], (N, C2, L2), jnp.float32)

    # double_conv params (PyTorch conv weight layout (Cout, Cin, K))
    w1_t = 0.1 * jax.random.normal(ks[2], (out_channels, in_channels, K), jnp.float32)
    b1   = 0.1 * jax.random.normal(ks[3], (out_channels,), jnp.float32)
    g1   = 1.0 + 0.1 * jax.random.normal(ks[4], (out_channels,), jnp.float32)
    be1  = 0.1 * jax.random.normal(ks[5], (out_channels,), jnp.float32)
    m1   = 0.1 * jax.random.normal(ks[6], (out_channels,), jnp.float32)
    v1   = jnp.abs(jax.random.normal(ks[7], (out_channels,), jnp.float32)) + 0.5

    w2_t = 0.1 * jax.random.normal(ks[8], (out_channels, out_channels, K), jnp.float32)
    b2   = 0.1 * jax.random.normal(ks[9], (out_channels,), jnp.float32)
    g2   = 1.0 + 0.1 * jax.random.normal(ks[10], (out_channels,), jnp.float32)
    be2  = 0.1 * jax.random.normal(ks[11], (out_channels,), jnp.float32)
    m2   = 0.1 * jax.random.normal(ks[12], (out_channels,), jnp.float32)
    v2   = jnp.abs(jax.random.normal(ks[13], (out_channels,), jnp.float32)) + 0.5

    params = prepare_params(w1_t, b1, g1, be1, m1, v1,
                            w2_t, b2, g2, be2, m2, v2,
                            skip_channels=C2)

    out = up_forward(x1, x2, params)
    out = jax.block_until_ready(out)

    # correctness vs pure-JAX reference of the PyTorch forward
    x1u = upsample_linear_align_corners(x1, 2)
    diff = L2 - x1u.shape[2]
    x1p = jnp.pad(x1u, ((0, 0), (0, 0), (diff // 2, diff - diff // 2)))
    xcat = jnp.concatenate([x2, x1p], axis=1)
    ref = double_conv_ref(xcat, w1_t, b1, g1, be1, m1, v1,
                          w2_t, b2, g2, be2, m2, v2)

    assert out.shape == (N, out_channels, L2), out.shape
    assert jnp.allclose(out, ref, atol=1e-4, rtol=1e-4), \
        float(jnp.max(jnp.abs(out - ref)))
    print("KERNEL_OK")
</pallas_src>

<mosaic_0001>
module attributes {stable_mosaic.version = 11 : i64} {
  func.func @up_double_conv_kernel(%arg0: i32, %arg1: memref<1x4x16xf32, #tpu.memory_space<vmem>>, %arg2: memref<1x4x7xf32, #tpu.memory_space<vmem>>, %arg3: memref<7x20xf32, #tpu.memory_space<vmem>>, %arg4: memref<5x4x4xf32, #tpu.memory_space<vmem>>, %arg5: memref<5x4x4xf32, #tpu.memory_space<vmem>>, %arg6: memref<4x1xf32, #tpu.memory_space<vmem>>, %arg7: memref<5x4x4xf32, #tpu.memory_space<vmem>>, %arg8: memref<4x1xf32, #tpu.memory_space<vmem>>, %arg9: memref<1x4x16xf32, #tpu.memory_space<vmem>>, %arg10: memref<4x20xf32, #tpu.memory_space<vmem>>, %arg11: memref<4x20xf32, #tpu.memory_space<vmem>>) attributes {dimension_semantics = [#tpu.dimension_semantics<parallel>], iteration_bounds = array<i64: 2>, scalar_prefetch = 0 : i64, scratch_operands = 2 : i64, tpu.core_type = #tpu.core_type<tc>, window_params = [{transform_indices = @transform_0, window_bounds = array<i64: 1, 4, 16>}, {transform_indices = @transform_1, window_bounds = array<i64: 1, 4, 7>}, {pipeline_mode = #tpu.pipeline_mode<synchronous>, transform_indices = @transform_2, window_bounds = array<i64: 7, 20>}, {pipeline_mode = #tpu.pipeline_mode<synchronous>, transform_indices = @transform_3, window_bounds = array<i64: 5, 4, 4>}, {pipeline_mode = #tpu.pipeline_mode<synchronous>, transform_indices = @transform_4, window_bounds = array<i64: 5, 4, 4>}, {pipeline_mode = #tpu.pipeline_mode<synchronous>, transform_indices = @transform_5, window_bounds = array<i64: 4, 1>}, {pipeline_mode = #tpu.pipeline_mode<synchronous>, transform_indices = @transform_6, window_bounds = array<i64: 5, 4, 4>}, {pipeline_mode = #tpu.pipeline_mode<synchronous>, transform_indices = @transform_7, window_bounds = array<i64: 4, 1>}, {transform_indices = @transform_8, window_bounds = array<i64: 1, 4, 16>}]} {
    %c0 = arith.constant 0 : index
    %c0_0 = arith.constant 0 : index
    %c0_1 = arith.constant 0 : index
    %0 = vector.load %arg2[%c0, %c0_0, %c0_1] : memref<1x4x7xf32, #tpu.memory_space<vmem>>, vector<1x4x7xf32>
    %1 = vector.shape_cast %0 : vector<1x4x7xf32> to vector<4x7xf32>
    %c0_2 = arith.constant 0 : index
    %c0_3 = arith.constant 0 : index
    %2 = vector.load %arg3[%c0_2, %c0_3] : memref<7x20xf32, #tpu.memory_space<vmem>>, vector<7x20xf32>
    %cst = arith.constant dense<0.000000e+00> : vector<4x20xf32>
    %3 = tpu.matmul %1, %2, %cst {dimension_numbers = #tpu.dot_dimension_numbers<[1], [0], [0], [1], [0, 0, 1, 1], [], []>} : vector<4x7xf32>, vector<7x20xf32>, vector<4x20xf32> -> vector<4x20xf32>
    %cst_4 = arith.constant 0.000000e+00 : f32
    %4 = vector.broadcast %cst_4 : f32 to vector<4x20xf32>
    %c0_5 = arith.constant 0 : index
    %c0_6 = arith.constant 0 : index
    %5 = vector.load %arg10[%c0_5, %c0_6] : memref<4x20xf32, #tpu.memory_space<vmem>>, vector<4x20xf32>
    tpu.vector_store %arg10[%c0_5, %c0_6], %4 {strides = array<i32>} : memref<4x20xf32, #tpu.memory_space<vmem>>, vector<4x20xf32>,
    %c0_7 = arith.constant 0 : index
    %c0_8 = arith.constant 0 : index
    %c0_9 = arith.constant 0 : index
    %6 = vector.load %arg1[%c0_7, %c0_8, %c0_9] : memref<1x4x16xf32, #tpu.memory_space<vmem>>, vector<1x4x16xf32>
    %7 = vector.shape_cast %6 : vector<1x4x16xf32> to vector<4x16xf32>
    %c0_10 = arith.constant 0 : index
    %c2 = arith.constant 2 : index
    %8 = vector.load %arg10[%c0_10, %c2] : memref<4x20xf32, #tpu.memory_space<vmem>>, vector<4x16xf32>
    tpu.vector_store %arg10[%c0_10, %c2], %7 {strides = array<i32>} : memref<4x20xf32, #tpu.memory_space<vmem>>, vector<4x16xf32>,
    %cst_11 = arith.constant 0.000000e+00 : f32
    %9 = vector.broadcast %cst_11 : f32 to vector<4x16xf32>
    %c0_12 = arith.constant 0 : index
    %c0_13 = arith.constant 0 : index
    %c0_14 = arith.constant 0 : index
    %10 = vector.load %arg4[%c0_12, %c0_13, %c0_14] : memref<5x4x4xf32, #tpu.memory_space<vmem>>, vector<1x4x4xf32>
    %11 = vector.shape_cast %10 : vector<1x4x4xf32> to vector<4x4xf32>
    %c0_15 = arith.constant 0 : index
    %c0_16 = arith.constant 0 : index
    %12 = vector.load %arg10[%c0_15, %c0_16] : memref<4x20xf32, #tpu.memory_space<vmem>>, vector<4x16xf32>
    %cst_17 = arith.constant dense<0.000000e+00> : vector<4x16xf32>
    %13 = tpu.matmul %11, %12, %cst_17 {dimension_numbers = #tpu.dot_dimension_numbers<[1], [0], [0], [1], [0, 0, 1, 1], [], []>} : vector<4x4xf32>, vector<4x16xf32>, vector<4x16xf32> -> vector<4x16xf32>
    %14 = arith.addf %9, %13 : vector<4x16xf32>
    %c0_18 = arith.constant 0 : index
    %c0_19 = arith.constant 0 : index
    %c0_20 = arith.constant 0 : index
    %15 = vector.load %arg5[%c0_18, %c0_19, %c0_20] : memref<5x4x4xf32, #tpu.memory_space<vmem>>, vector<1x4x4xf32>
    %16 = vector.shape_cast %15 : vector<1x4x4xf32> to vector<4x4xf32>
    %17 = vector.extract_strided_slice %3 {offsets = [0, 0], sizes = [4, 16], strides = [1, 1]} : vector<4x20xf32> to vector<4x16xf32>
    %cst_21 = arith.constant dense<0.000000e+00> : vector<4x16xf32>
    %18 = tpu.matmul %16, %17, %cst_21 {dimension_numbers = #tpu.dot_dimension_numbers<[1], [0], [0], [1], [0, 0, 1, 1], [], []>} : vector<4x4xf32>, vector<4x16xf32>, vector<4x16xf32> -> vector<4x16xf32>
    %19 = arith.addf %14, %18 : vector<4x16xf32>
    %c1 = arith.constant 1 : index
    %c0_22 = arith.constant 0 : index
    %c0_23 = arith.constant 0 : index
    %20 = vector.load %arg4[%c1, %c0_22, %c0_23] : memref<5x4x4xf32, #tpu.memory_space<vmem>>, vector<1x4x4xf32>
    %21 = vector.shape_cast %20 : vector<1x4x4xf32> to vector<4x4xf32>
    %c0_24 = arith.constant 0 : index
    %c1_25 = arith.constant 1 : index
    %22 = vector.load %arg10[%c0_24, %c1_25] : memref<4x20xf32, #tpu.memory_space<vmem>>, vector<4x16xf32>
    %cst_26 = arith.constant dense<0.000000e+00> : vector<4x16xf32>
    %23 = tpu.matmul %21, %22, %cst_26 {dimension_numbers = #tpu.dot_dimension_numbers<[1], [0], [0], [1], [0, 0, 1, 1], [], []>} : vector<4x4xf32>, vector<4x16xf32>, vector<4x16xf32> -> vector<4x16xf32>
    %24 = arith.addf %19, %23 : vector<4x16xf32>
    %c1_27 = arith.constant 1 : index
    %c0_28 = arith.constant 0 : index
    %c0_29 = arith.constant 0 : index
    %25 = vector.load %arg5[%c1_27, %c0_28, %c0_29] : memref<5x4x4xf32, #tpu.memory_space<vmem>>, vector<1x4x4xf32>
    %26 = vector.shape_cast %25 : vector<1x4x4xf32> to vector<4x4xf32>
    %27 = vector.extract_strided_slice %3 {offsets = [0, 1], sizes = [4, 16], strides = [1, 1]} : vector<4x20xf32> to vector<4x16xf32>
    %cst_30 = arith.constant dense<0.000000e+00> : vector<4x16xf32>
    %28 = tpu.matmul %26, %27, %cst_30 {dimension_numbers = #tpu.dot_dimension_numbers<[1], [0], [0], [1], [0, 0, 1, 1], [], []>} : vector<4x4xf32>, vector<4x16xf32>, vector<4x16xf32> -> vector<4x16xf32>
    %29 = arith.addf %24, %28 : vector<4x16xf32>
    %c2_31 = arith.constant 2 : index
    %c0_32 = arith.constant 0 : index
    %c0_33 = arith.constant 0 : index
    %30 = vector.load %arg4[%c2_31, %c0_32, %c0_33] : memref<5x4x4xf32, #tpu.memory_space<vmem>>, vector<1x4x4xf32>
    %31 = vector.shape_cast %30 : vector<1x4x4xf32> to vector<4x4xf32>
    %c0_34 = arith.constant 0 : index
    %c2_35 = arith.constant 2 : index
    %32 = vector.load %arg10[%c0_34, %c2_35] : memref<4x20xf32, #tpu.memory_space<vmem>>, vector<4x16xf32>
    %cst_36 = arith.constant dense<0.000000e+00> : vector<4x16xf32>
    %33 = tpu.matmul %31, %32, %cst_36 {dimension_numbers = #tpu.dot_dimension_numbers<[1], [0], [0], [1], [0, 0, 1, 1], [], []>} : vector<4x4xf32>, vector<4x16xf32>, vector<4x16xf32> -> vector<4x16xf32>
    %34 = arith.addf %29, %33 : vector<4x16xf32>
    %c2_37 = arith.constant 2 : index
    %c0_38 = arith.constant 0 : index
    %c0_39 = arith.constant 0 : index
    %35 = vector.load %arg5[%c2_37, %c0_38, %c0_39] : memref<5x4x4xf32, #tpu.memory_space<vmem>>, vector<1x4x4xf32>
    %36 = vector.shape_cast %35 : vector<1x4x4xf32> to vector<4x4xf32>
    %37 = vector.extract_strided_slice %3 {offsets = [0, 2], sizes = [4, 16], strides = [1, 1]} : vector<4x20xf32> to vector<4x16xf32>
    %cst_40 = arith.constant dense<0.000000e+00> : vector<4x16xf32>
    %38 = tpu.matmul %36, %37, %cst_40 {dimension_numbers = #tpu.dot_dimension_numbers<[1], [0], [0], [1], [0, 0, 1, 1], [], []>} : vector<4x4xf32>, vector<4x16xf32>, vector<4x16xf32> -> vector<4x16xf32>
    %39 = arith.addf %34, %38 : vector<4x16xf32>
    %c3 = arith.constant 3 : index
    %c0_41 = arith.constant 0 : index
    %c0_42 = arith.constant 0 : index
    %40 = vector.load %arg4[%c3, %c0_41, %c0_42] : memref<5x4x4xf32, #tpu.memory_space<vmem>>, vector<1x4x4xf32>
    %41 = vector.shape_cast %40 : vector<1x4x4xf32> to vector<4x4xf32>
    %c0_43 = arith.constant 0 : index
    %c3_44 = arith.constant 3 : index
    %42 = vector.load %arg10[%c0_43, %c3_44] : memref<4x20xf32, #tpu.memory_space<vmem>>, vector<4x16xf32>
    %cst_45 = arith.constant dense<0.000000e+00> : vector<4x16xf32>
    %43 = tpu.matmul %41, %42, %cst_45 {dimension_numbers = #tpu.dot_dimension_numbers<[1], [0], [0], [1], [0, 0, 1, 1], [], []>} : vector<4x4xf32>, vector<4x16xf32>, vector<4x16xf32> -> vector<4x16xf32>
    %44 = arith.addf %39, %43 : vector<4x16xf32>
    %c3_46 = arith.constant 3 : index
    %c0_47 = arith.constant 0 : index
    %c0_48 = arith.constant 0 : index
    %45 = vector.load %arg5[%c3_46, %c0_47, %c0_48] : memref<5x4x4xf32, #tpu.memory_space<vmem>>, vector<1x4x4xf32>
    %46 = vector.shape_cast %45 : vector<1x4x4xf32> to vector<4x4xf32>
    %47 = vector.extract_strided_slice %3 {offsets = [0, 3], sizes = [4, 16], strides = [1, 1]} : vector<4x20xf32> to vector<4x16xf32>
    %cst_49 = arith.constant dense<0.000000e+00> : vector<4x16xf32>
    %48 = tpu.matmul %46, %47, %cst_49 {dimension_numbers = #tpu.dot_dimension_numbers<[1], [0], [0], [1], [0, 0, 1, 1], [], []>} : vector<4x4xf32>, vector<4x16xf32>, vector<4x16xf32> -> vector<4x16xf32>
    %49 = arith.addf %44, %48 : vector<4x16xf32>
    %c4 = arith.constant 4 : index
    %c0_50 = arith.constant 0 : index
    %c0_51 = arith.constant 0 : index
    %50 = vector.load %arg4[%c4, %c0_50, %c0_51] : memref<5x4x4xf32, #tpu.memory_space<vmem>>, vector<1x4x4xf32>
    %51 = vector.shape_cast %50 : vector<1x4x4xf32> to vector<4x4xf32>
    %c0_52 = arith.constant 0 : index
    %c4_53 = arith.constant 4 : index
    %52 = vector.load %arg10[%c0_52, %c4_53] : memref<4x20xf32, #tpu.memory_space<vmem>>, vector<4x16xf32>
    %cst_54 = arith.constant dense<0.000000e+00> : vector<4x16xf32>
    %53 = tpu.matmul %51, %52, %cst_54 {dimension_numbers = #tpu.dot_dimension_numbers<[1], [0], [0], [1], [0, 0, 1, 1], [], []>} : vector<4x4xf32>, vector<4x16xf32>, vector<4x16xf32> -> vector<4x16xf32>
    %54 = arith.addf %49, %53 : vector<4x16xf32>
    %c4_55 = arith.constant 4 : index
    %c0_56 = arith.constant 0 : index
    %c0_57 = arith.constant 0 : index
    %55 = vector.load %arg5[%c4_55, %c0_56, %c0_57] : memref<5x4x4xf32, #tpu.memory_space<vmem>>, vector<1x4x4xf32>
    %56 = vector.shape_cast %55 : vector<1x4x4xf32> to vector<4x4xf32>
    %57 = vector.extract_strided_slice %3 {offsets = [0, 4], sizes = [4, 16], strides = [1, 1]} : vector<4x20xf32> to vector<4x16xf32>
    %cst_58 = arith.constant dense<0.000000e+00> : vector<4x16xf32>
    %58 = tpu.matmul %56, %57, %cst_58 {dimension_numbers = #tpu.dot_dimension_numbers<[1], [0], [0], [1], [0, 0, 1, 1], [], []>} : vector<4x4xf32>, vector<4x16xf32>, vector<4x16xf32> -> vector<4x16xf32>
    %59 = arith.addf %54, %58 : vector<4x16xf32>
    %c0_59 = arith.constant 0 : index
    %c0_60 = arith.constant 0 : index
    %60 = vector.load %arg6[%c0_59, %c0_60] : memref<4x1xf32, #tpu.memory_space<vmem>>, vector<4x1xf32>
    %61 = vector.broadcast %60 : vector<4x1xf32> to vector<4x16xf32>
    %62 = arith.addf %59, %61 : vector<4x16xf32>
    %cst_61 = arith.constant 0.000000e+00 : f32
    %63 = vector.broadcast %cst_61 : f32 to vector<4x16xf32>
    %64 = arith.maximumf %62, %63 : vector<4x16xf32>
    %cst_62 = arith.constant 0.000000e+00 : f32
    %65 = vector.broadcast %cst_62 : f32 to vector<4x20xf32>
    %c0_63 = arith.constant 0 : index
    %c0_64 = arith.constant 0 : index
    %66 = vector.load %arg11[%c0_63, %c0_64] : memref<4x20xf32, #tpu.memory_space<vmem>>, vector<4x20xf32>
    tpu.vector_store %arg11[%c0_63, %c0_64], %65 {strides = array<i32>} : memref<4x20xf32, #tpu.memory_space<vmem>>, vector<4x20xf32>,
    %c0_65 = arith.constant 0 : index
    %c2_66 = arith.constant 2 : index
    %67 = vector.load %arg11[%c0_65, %c2_66] : memref<4x20xf32, #tpu.memory_space<vmem>>, vector<4x16xf32>
    tpu.vector_store %arg11[%c0_65, %c2_66], %64 {strides = array<i32>} : memref<4x20xf32, #tpu.memory_space<vmem>>, vector<4x16xf32>,
    %cst_67 = arith.constant 0.000000e+00 : f32
    %68 = vector.broadcast %cst_67 : f32 to vector<4x16xf32>
    %c0_68 = arith.constant 0 : index
    %c0_69 = arith.constant 0 : index
    %c0_70 = arith.constant 0 : index
    %69 = vector.load %arg7[%c0_68, %c0_69, %c0_70] : memref<5x4x4xf32, #tpu.memory_space<vmem>>, vector<1x4x4xf32>
    %70 = vector.shape_cast %69 : vector<1x4x4xf32> to vector<4x4xf32>
    %c0_71 = arith.constant 0 : index
    %c0_72 = arith.constant 0 : index
    %71 = vector.load %arg11[%c0_71, %c0_72] : memref<4x20xf32, #tpu.memory_space<vmem>>, vector<4x16xf32>
    %cst_73 = arith.constant dense<0.000000e+00> : vector<4x16xf32>
    %72 = tpu.matmul %70, %71, %cst_73 {dimension_numbers = #tpu.dot_dimension_numbers<[1], [0], [0], [1], [0, 0, 1, 1], [], []>} : vector<4x4xf32>, vector<4x16xf32>, vector<4x16xf32> -> vector<4x16xf32>
    %73 = arith.addf %68, %72 : vector<4x16xf32>
    %c1_74 = arith.constant 1 : index
    %c0_75 = arith.constant 0 : index
    %c0_76 = arith.constant 0 : index
    %74 = vector.load %arg7[%c1_74, %c0_75, %c0_76] : memref<5x4x4xf32, #tpu.memory_space<vmem>>, vector<1x4x4xf32>
    %75 = vector.shape_cast %74 : vector<1x4x4xf32> to vector<4x4xf32>
    %c0_77 = arith.constant 0 : index
    %c1_78 = arith.constant 1 : index
    %76 = vector.load %arg11[%c0_77, %c1_78] : memref<4x20xf32, #tpu.memory_space<vmem>>, vector<4x16xf32>
    %cst_79 = arith.constant dense<0.000000e+00> : vector<4x16xf32>
    %77 = tpu.matmul %75, %76, %cst_79 {dimension_numbers = #tpu.dot_dimension_numbers<[1], [0], [0], [1], [0, 0, 1, 1], [], []>} : vector<4x4xf32>, vector<4x16xf32>, vector<4x16xf32> -> vector<4x16xf32>
    %78 = arith.addf %73, %77 : vector<4x16xf32>
    %c2_80 = arith.constant 2 : index
    %c0_81 = arith.constant 0 : index
    %c0_82 = arith.constant 0 : index
    %79 = vector.load %arg7[%c2_80, %c0_81, %c0_82] : memref<5x4x4xf32, #tpu.memory_space<vmem>>, vector<1x4x4xf32>
    %80 = vector.shape_cast %79 : vector<1x4x4xf32> to vector<4x4xf32>
    %c0_83 = arith.constant 0 : index
    %c2_84 = arith.constant 2 : index
    %81 = vector.load %arg11[%c0_83, %c2_84] : memref<4x20xf32, #tpu.memory_space<vmem>>, vector<4x16xf32>
    %cst_85 = arith.constant dense<0.000000e+00> : vector<4x16xf32>
    %82 = tpu.matmul %80, %81, %cst_85 {dimension_numbers = #tpu.dot_dimension_numbers<[1], [0], [0], [1], [0, 0, 1, 1], [], []>} : vector<4x4xf32>, vector<4x16xf32>, vector<4x16xf32> -> vector<4x16xf32>
    %83 = arith.addf %78, %82 : vector<4x16xf32>
    %c3_86 = arith.constant 3 : index
    %c0_87 = arith.constant 0 : index
    %c0_88 = arith.constant 0 : index
    %84 = vector.load %arg7[%c3_86, %c0_87, %c0_88] : memref<5x4x4xf32, #tpu.memory_space<vmem>>, vector<1x4x4xf32>
    %85 = vector.shape_cast %84 : vector<1x4x4xf32> to vector<4x4xf32>
    %c0_89 = arith.constant 0 : index
    %c3_90 = arith.constant 3 : index
    %86 = vector.load %arg11[%c0_89, %c3_90] : memref<4x20xf32, #tpu.memory_space<vmem>>, vector<4x16xf32>
    %cst_91 = arith.constant dense<0.000000e+00> : vector<4x16xf32>
    %87 = tpu.matmul %85, %86, %cst_91 {dimension_numbers = #tpu.dot_dimension_numbers<[1], [0], [0], [1], [0, 0, 1, 1], [], []>} : vector<4x4xf32>, vector<4x16xf32>, vector<4x16xf32> -> vector<4x16xf32>
    %88 = arith.addf %83, %87 : vector<4x16xf32>
    %c4_92 = arith.constant 4 : index
    %c0_93 = arith.constant 0 : index
    %c0_94 = arith.constant 0 : index
    %89 = vector.load %arg7[%c4_92, %c0_93, %c0_94] : memref<5x4x4xf32, #tpu.memory_space<vmem>>, vector<1x4x4xf32>
    %90 = vector.shape_cast %89 : vector<1x4x4xf32> to vector<4x4xf32>
    %c0_95 = arith.constant 0 : index
    %c4_96 = arith.constant 4 : index
    %91 = vector.load %arg11[%c0_95, %c4_96] : memref<4x20xf32, #tpu.memory_space<vmem>>, vector<4x16xf32>
    %cst_97 = arith.constant dense<0.000000e+00> : vector<4x16xf32>
    %92 = tpu.matmul %90, %91, %cst_97 {dimension_numbers = #tpu.dot_dimension_numbers<[1], [0], [0], [1], [0, 0, 1, 1], [], []>} : vector<4x4xf32>, vector<4x16xf32>, vector<4x16xf32> -> vector<4x16xf32>
    %93 = arith.addf %88, %92 : vector<4x16xf32>
    %c0_98 = arith.constant 0 : index
    %c0_99 = arith.constant 0 : index
    %94 = vector.load %arg8[%c0_98, %c0_99] : memref<4x1xf32, #tpu.memory_space<vmem>>, vector<4x1xf32>
    %95 = vector.broadcast %94 : vector<4x1xf32> to vector<4x16xf32>
    %96 = arith.addf %93, %95 : vector<4x16xf32>
    %cst_100 = arith.constant 0.000000e+00 : f32
    %97 = vector.broadcast %cst_100 : f32 to vector<4x16xf32>
    %98 = arith.maximumf %96, %97 : vector<4x16xf32>
    %c0_101 = arith.constant 0 : index
    %c0_102 = arith.constant 0 : index
    %c0_103 = arith.constant 0 : index
    %99 = vector.load %arg9[%c0_101, %c0_102, %c0_103] : memref<1x4x16xf32, #tpu.memory_space<vmem>>, vector<1x4x16xf32>
    %100 = vector.shape_cast %99 : vector<1x4x16xf32> to vector<4x16xf32>
    %101 = vector.shape_cast %98 : vector<4x16xf32> to vector<1x4x16xf32>
    tpu.vector_store %arg9[%c0_101, %c0_102, %c0_103], %101 {strides = array<i32>} : memref<1x4x16xf32, #tpu.memory_space<vmem>>, vector<1x4x16xf32>,
    return
  }
  func.func @transform_0(%arg0: i32) -> (i32, i32, i32) {
    %c0_i32 = arith.constant 0 : i32
    %c0_i32_0 = arith.constant 0 : i32
    %c0_i32_1 = arith.constant 0 : i32
    return %arg0, %c0_i32, %c0_i32_0 : i32, i32, i32
  }
  func.func @transform_1(%arg0: i32) -> (i32, i32, i32) {
    %c0_i32 = arith.constant 0 : i32
    %c0_i32_0 = arith.constant 0 : i32
    %c0_i32_1 = arith.constant 0 : i32
    return %arg0, %c0_i32, %c0_i32_0 : i32, i32, i32
  }
  func.func @transform_2(%arg0: i32) -> (i32, i32) {
    %c0_i32 = arith.constant 0 : i32
    %c0_i32_0 = arith.constant 0 : i32
    %c0_i32_1 = arith.constant 0 : i32
    return %c0_i32, %c0_i32_0 : i32, i32
  }
  func.func @transform_3(%arg0: i32) -> (i32, i32, i32) {
    %c0_i32 = arith.constant 0 : i32
    %c0_i32_0 = arith.constant 0 : i32
    %c0_i32_1 = arith.constant 0 : i32
    %c0_i32_2 = arith.constant 0 : i32
    return %c0_i32, %c0_i32_0, %c0_i32_1 : i32, i32, i32
  }
  func.func @transform_4(%arg0: i32) -> (i32, i32, i32) {
    %c0_i32 = arith.constant 0 : i32
    %c0_i32_0 = arith.constant 0 : i32
    %c0_i32_1 = arith.constant 0 : i32
    %c0_i32_2 = arith.constant 0 : i32
    return %c0_i32, %c0_i32_0, %c0_i32_1 : i32, i32, i32
  }
  func.func @transform_5(%arg0: i32) -> (i32, i32) {
    %c0_i32 = arith.constant 0 : i32
    %c0_i32_0 = arith.constant 0 : i32
    %c0_i32_1 = arith.constant 0 : i32
    return %c0_i32, %c0_i32_0 : i32, i32
  }
  func.func @transform_6(%arg0: i32) -> (i32, i32, i32) {
    %c0_i32 = arith.constant 0 : i32
    %c0_i32_0 = arith.constant 0 : i32
    %c0_i32_1 = arith.constant 0 : i32
    %c0_i32_2 = arith.constant 0 : i32
    return %c0_i32, %c0_i32_0, %c0_i32_1 : i32, i32, i32
  }
  func.func @transform_7(%arg0: i32) -> (i32, i32) {
    %c0_i32 = arith.constant 0 : i32
    %c0_i32_0 = arith.constant 0 : i32
    %c0_i32_1 = arith.constant 0 : i32
    return %c0_i32, %c0_i32_0 : i32, i32
  }
  func.func @transform_8(%arg0: i32) -> (i32, i32, i32) {
    %c0_i32 = arith.constant 0 : i32
    %c0_i32_0 = arith.constant 0 : i32
    %c0_i32_1 = arith.constant 0 : i32
    return %arg0, %c0_i32, %c0_i32_0 : i32, i32, i32
  }
}

</mosaic_0001>

<bundles_post_ra>
// kernel: tpu_custom_call.1
= control target key start
LH: loop header
LB: loop body
LE: loop exit
PB: predicated region body
PF: predicated region fallthrough
CT: control target
= control target key end

     0   :  { %13 = vsyncpa [#allocation5], 0  ;;  %s1319_s0 = inlined_call_operand.vmem [shape: f32[2,4,16], index: 0, kind: input, shape index: {}]   ;;  %s1320_s1 = inlined_call_operand.vmem [shape: f32[2,4,7], index: 1, kind: input, shape index: {}]   ;;  %s1321_s2 = inlined_call_operand.vmem [shape: f32[7,20], index: 2, kind: input, shape index: {}]   ;;  %s1322_s3 = inlined_call_operand.vmem [shape: f32[5,4,4], index: 3, kind: input, shape index: {}]   ;;  %s1323_s4 = inlined_call_operand.vmem [shape: f32[5,4,4], index: 4, kind: input, shape index: {}]   ;;  %s1324_s5 = inlined_call_operand.vmem [shape: f32[4,1], index: 5, kind: input, shape index: {}]   ;;  %s1325_s6 = inlined_call_operand.vmem [shape: f32[5,4,4], index: 6, kind: input, shape index: {}]   ;;  %s1326_s7 = inlined_call_operand.vmem [shape: f32[4,1], index: 7, kind: input, shape index: {}]   ;;  %s1327_s8 = inlined_call_operand.hbm [shape: f32[2,4,16], index: 8, kind: output, shape index: {}]  }
   0x1   :  { %15 = vsyncpa [#allocation5 + $0x1], 0  ;;  %s1131_s27 = smov 0   ;;  %s1133_s28 = smov 0  }
   0x2   :  { %s1135_s29 = smov 0   ;;  %s1137_s30 = smov 0  }
   0x3 LB: > { %s1152_s9 = sadd.s32 4294967295, %s1077_s30   ;;  %s912_s10 = sadd.s32 4294967294, %s1077_s30   ;;  %s1077_s30 = sphi %s1137_s30, %s1333_s30   ;;  %s1073_s29 = sphi %s1135_s29, %s1332_s29   ;;  %s1069_s28 = sphi %s1133_s28, %s1331_s28   ;;  %s1065_s27 = sphi %s1131_s27, %s1330_s27  }
   0x4   : > { %s1156_s11 = sadd.s32 1, %s1077_s30   ;;  %s206_s12 = sadd.s32 1, %s1073_s29 }
   0x5   : > { %s203_s13 = ssub.s32 %s1077_s30, %s1156_s11  ;;  %p216_p0 = scmp.ne.s32.totalorder %s1073_s29, %s1069_s28 }
   0x6   : > { %p204_p1 = scmp.eq.s32.totalorder %s203_s13, 0  ;;  %p217_p2 = scmp.eq.s32.totalorder %s1152_s9, 1 }
   0x7   : > { %p222_p3 = scmp.ne.s32.totalorder %s1069_s28, %s1065_s27  ;;  %p223_p4 = scmp.eq.s32.totalorder %s912_s10, 1 }
   0x8   : > { %s1167_s14 = scalar_select %p204_p1, %s1073_s29, %s206_s12  }
   0x9   : > { %p1169_p5 = por %p217_p2, %p216_p0  ;;  %p1173_p6 = por %p223_p4, %p222_p3 }
   0xa   : > { %p915_p7 = scmp.ge.s32.totalorder %s1077_s30, 1  ;;  %p273_p8 = scmp.lt.s32.totalorder %s1077_s30, 3 }
   0xc   : > { %p274_p9 = pnand %p915_p7, %p273_p8 }
   0xd   : > { %p310_p10 = scmp.lt.s32.totalorder (!%p274_p9), %s1152_s9, 1  ;;  %s1080_s10 = smov (!%p274_p9), 2  }
   0xe   : > { %277 = sbr.rel (%p274_p9) target bundleno = 800 (0x320), region = 52  ;;  %s1081_s12 = smov (!%p274_p9), 125  }
   0xf   : > { %s1082_s13 = smov (!%p274_p9), 127   ;;  %s1083_s17 = smov (!%p274_p9), 126  }
  0x10   : > { %s1084_s18 = smov (!%p274_p9), 124   ;;  %s307_s24 = sand.u32 (!%p274_p9), 1, %s1069_s28  }
  0x11   : > { %s916_s25 = sshll.u32 (!%p274_p9), %s307_s24, 2 }
  0x13   : > { %v319_v0 = vld [vmem:[%s1321_s2] sm:$0x7f]  ;;  %vm324_vm0 = vcmask 1046528   ;;  %vm348_vm1 = vcmask 158720   ;;  %s311_s19 = scalar_select %p310_p10, %s1152_s9, 1  ;;  %v1079_v1 = vmov 0.0  }
  0x14   : > { %919 = vmatpush.msk.msra.mxu0 %vm324_vm0, %v319_v0  ;;  %349 = vst.msk [vmem:[#allocation2] sm:$0xf] %vm348_vm1, %v1079_v1  ;;  %vm320_vm2 = vcmask 56320   ;;  %vm355_vm3 = vcmask 142352   ;;  %vm364_vm4 = vcmask 1043456   ;;  %vm360_vm5 = vcmask 31744  }
  0x15   : > { %662 = vst.msk [vmem:[#allocation3] sm:$0xf] %vm348_vm1, %v1079_v1  ;;  %s917_s20 = sshll.u32 %s311_s19, 2  ;;  %v359_v7 = vld [vmem:[%s1323_s4] sm:$0xf]  ;;  %v1085_v13 = vmov 0  }
  0x16   : > { %s317_s23 = scalar_lea.vmem %s1320_s1, %s917_s20  ;;  %s313_s26 = scalar_lea.vmem %s1319_s0, %s917_s20  ;;  %v357_v8 = vld [vmem:[%s1322_s3] sm:$0xf]  ;;  %v931_v10 = vld [vmem:[%s1322_s3 + $0x8] sm:$0xf]  ;;  %1013 = vset.pattern.permute.xlu0 %v1085_v13  ;;  %1014 = vset.pattern.permute.xlu1 %v1085_v13  ;;  %v943_v14 = vld [vmem:[%s1322_s3 + $0x10] sm:$0xf] }
  0x17   : > { %v318_v2 = vld [vmem:[%s317_s23] sm:$0xf]  ;;  %v925_v17 = vld [vmem:[%s1322_s3 + $0x4] sm:$0xf]  ;;  %v934_v18 = vld [vmem:[%s1323_s4 + $0x8] sm:$0xf] }
  0x18   : > { %v350_v3 = vld [vmem:[%s313_s26] sm:$0xf]  ;;  %920 = vmatmul.msk.f32.vlgmr.msra.gmra.mxu0 %vm320_vm2, %v318_v2  ;;  %v937_v21 = vld [vmem:[%s1322_s3 + $0xc] sm:$0xf]  ;;  %v928_v22 = vld [vmem:[%s1323_s4 + $0x4] sm:$0xf] }
  0x19   : > { %352 = vrot.lane.b32.xlu0 %v350_v3, %s1080_s10  ;;  %v654_v12 = vld [vmem:[%s1324_s5] sm:$0xf]  ;;  %v946_v23 = vld [vmem:[%s1323_s4 + $0x10] sm:$0xf]  ;;  %v940_v25 = vld [vmem:[%s1323_s4 + $0xc] sm:$0xf] }
  0x1a   : > { %v668_v51 = vld [vmem:[%s1325_s6] sm:$0xf]  ;;  %v949_v53 = vld [vmem:[%s1325_s6 + $0x4] sm:$0xf]  ;;  %v960_v55 = vld [vmem:[%s1325_s6 + $0x10] sm:$0xf] }
  0x1b   : > { %v815_v52 = vld [vmem:[%s1326_s7] sm:$0xf]  ;;  %v957_v57 = vld [vmem:[%s1325_s6 + $0xc] sm:$0xf]  ;;  %v954_v58 = vld [vmem:[%s1325_s6 + $0x8] sm:$0xf] }
  0x1c   : > { %s964_s26 = sshll.u32 %s1152_s9, 2  ;;  %s309_s20 = scalar_lea.vmem [#allocation4], %s916_s25  ;;  %vm823_vm6 = vcmask 125952  }
  0x1d   : > { %s826_s9 = scalar_lea.sflag [#allocation5], %s307_s24  ;;  %s1035_s25 = scalar_lea.hbm %s1327_s8, 8 }
  0x8b   : > { %v353_v4 = vpop.permute.xlu0 %352 }
  0x8c   : > { %356 = vst.msk [vmem:[#allocation2] sm:$0xf] %vm355_vm3, %v353_v4 }
  0x93   : > { %v358_v5 = vld [vmem:[#allocation2] sm:$0xf] }
  0x94   : > { %536 = vrot.lane.b32.xlu2 %v358_v5, %s1081_s12  ;;  %416 = vrot.lane.b32.xlu0 %v358_v5, %s1082_s13 }
  0x95   : > { %923 = vmatpush.msk.msra.mxu2 %vm364_vm4, %v358_v5  ;;  %v345_v6 = vpop.f32.mrf.mxu0 }
  0x96   : > { %506 = vrot.lane.b32.xlu1 %v345_v6, %s1083_s17  ;;  %921 = vmatpush.msk.msra.mxu1 %vm364_vm4, %v345_v6 }
  0x97   : > { %922 = vmatmul.msk.f32.vlgmr.msra.gmra.mxu1 %vm360_vm5, %v359_v7  ;;  %924 = vmatmul.msk.f32.vlgmr.msra.gmra.mxu2 %vm360_vm5, %v357_v8 }
  0x9c   : > { %476 = vrot.lane.b32.xlu2 %v358_v5, %s1083_s17  ;;  %626 = vrot.lane.b32.xlu0 %v345_v6, %s1084_s18 }
  0x9e   : > { %446 = vrot.lane.b32.xlu1 %v345_v6, %s1082_s13 }
  0xa4   : > { %596 = vrot.lane.b32.xlu2 %v358_v5, %s1084_s18  ;;  %657 = vperm.xlu0 %1013, %v654_v12  }
  0xa6   : > { %566 = vrot.lane.b32.xlu1 %v345_v6, %s1081_s12 }
  0xee   : > { %v537_v9 = vpop.permute.xlu2 %536 }
  0xf6   : > { %v477_v11 = vpop.permute.xlu2 %476 }
  0xf7   : > { %932 = vmatpush.msk.msrb.mxu1 %vm364_vm4, %v477_v11 }
  0xf8   : > { %933 = vmatmul.msk.f32.vlgmr.msrb.gmra.mxu1 %vm360_vm5, %v931_v10 }
  0xfe   : > { %v597_v15 = vpop.permute.xlu2 %596 }
  0xff   : > { %944 = vmatpush.msk.msra.mxu1 %vm364_vm4, %v597_v15 }
 0x100   : > { %945 = vmatmul.msk.f32.vlgmr.msra.gmra.mxu1 %vm360_vm5, %v943_v14 }
 0x106   : > { %v417_v16 = vpop.permute.xlu0 %416 }
 0x107   : > { %926 = vmatpush.msk.msra.mxu3 %vm364_vm4, %v417_v16 }
 0x108   : > { %v507_v19 = vpop.permute.xlu1 %506  ;;  %927 = vmatmul.msk.f32.vlgmr.msra.gmra.mxu3 %vm360_vm5, %v925_v17 }
 0x109   : > { %938 = vmatpush.msk.msrb.mxu3 %vm364_vm4, %v537_v9  ;;  %935 = vmatpush.msk.msrb.mxu2 %vm364_vm4, %v507_v19 }
 0x10a   : > { %936 = vmatmul.msk.f32.vlgmr.msrb.gmra.mxu2 %vm360_vm5, %v934_v18 }
 0x10e   : > { %v627_v20 = vpop.permute.xlu0 %626 }
 0x10f   : > { %947 = vmatpush.msk.msra.mxu2 %vm364_vm4, %v627_v20 }
 0x110   : > { %v447_v24 = vpop.permute.xlu1 %446  ;;  %939 = vmatmul.msk.f32.vlgmr.msrb.gmra.mxu3 %vm360_vm5, %v937_v21 }
 0x111   : > { %929 = vmatpush.msk.msrb.mxu0 %vm364_vm4, %v447_v24 }
 0x112   : > { %930 = vmatmul.msk.f32.vlgmr.msrb.gmra.mxu0 %vm360_vm5, %v928_v22  ;;  %948 = vmatmul.msk.f32.vlgmr.msra.gmra.mxu2 %vm360_vm5, %v946_v23 }
 0x114   : > { %v385_v27 = vpop.f32.mrf.mxu1 }
 0x116   : > { %v658_v45 = vpop.permute.xlu0 %657 }
 0x118   : > { %v567_v26 = vpop.permute.xlu1 %566 }
 0x119   : > { %941 = vmatpush.msk.msra.mxu0 %vm364_vm4, %v567_v26 }
 0x11a   : > { %942 = vmatmul.msk.f32.vlgmr.msra.gmra.mxu0 %vm360_vm5, %v940_v25  ;;  %v411_v28 = vpop.f32.mrf.mxu2 }
 0x11b   : > { %v412_v29 = vadd.f32 %v411_v28, %v385_v27 }
 0x175   : > { %v500_v31 = vpop.f32.mrf.mxu1 }
 0x17d   : > { %v620_v41 = vpop.f32.mrf.mxu1 }
 0x18b   : > { %v440_v30 = vpop.f32.mrf.mxu3 }
 0x18c   : > { %v443_v32 = vadd.f32 %v440_v30, %v412_v29 }
 0x18d   : > { %v530_v34 = vpop.f32.mrf.mxu2 }
 0x18f   : > { %v470_v33 = vpop.f32.mrf.mxu0 }
 0x190   : > { %v473_v35 = vadd.f32 %v470_v33, %v443_v32 }
 0x192   : > { %v503_v36 = vadd.f32 %v500_v31, %v473_v35 }
 0x193   : > { %v560_v37 = vpop.f32.mrf.mxu3 }
 0x194   : > { %v533_v38 = vadd.f32 %v530_v34, %v503_v36 }
 0x195   : > { %v650_v43 = vpop.f32.mrf.mxu2 }
 0x196   : > { %v563_v39 = vadd.f32 %v560_v37, %v533_v38 }
 0x197   : > { %v590_v40 = vpop.f32.mrf.mxu0 }
 0x198   : > { %v593_v42 = vadd.f32 %v590_v40, %v563_v39 }
 0x19a   : > { %v623_v44 = vadd.f32 %v620_v41, %v593_v42 }
 0x19c   : > { %v653_v46 = vadd.f32 %v650_v43, %v623_v44 }
 0x19e   : > { %v660_v47 = vadd.f32 %v658_v45, %v653_v46 }
 0x1a0   : > { %v661_v48 = vmax.f32 %v660_v47, 0.0 }
 0x1a2   : > { %664 = vrot.lane.b32.xlu1 %v661_v48, %s1080_s10 }
 0x214   : > { %v665_v49 = vpop.permute.xlu1 %664 }
 0x215   : > { %667 = vst.msk [vmem:[#allocation3] sm:$0xf] %vm355_vm3, %v665_v49 }
 0x21c   : > { %v669_v50 = vld [vmem:[#allocation3] sm:$0xf] }
 0x21d   : > { %727 = vrot.lane.b32.xlu0 %v669_v50, %s1083_s17  ;;  %757 = vrot.lane.b32.xlu1 %v669_v50, %s1081_s12  ;;  %s836_s17 = scalar_lea.hbm %s1327_s8, %s964_s26  ;;  %s838_s12 = sshll.u32 %s309_s20, 4  ;;  %s839_s12 = int_to_ptr.vmem [resolvable:$true] %s838_s12 }
 0x21e   : > { %673 = vrot.lane.b32.xlu2 %v669_v50, %s1082_s13  ;;  %952 = vmatpush.msk.msrb.mxu0 %vm364_vm4, %v669_v50  ;;  %s840_s13 = sshll.u32 %s836_s17, 4  ;;  %s841_s13 = int_to_ptr.hbm [resolvable:$true] %s840_s13 }
 0x21f   : > { %953 = vmatmul.msk.f32.vlgmr.msrb.gmra.mxu0 %vm360_vm5, %v668_v51 }
 0x225   : > { %818 = vperm.xlu1 %1014, %v815_v52  }
 0x226   : > { %787 = vrot.lane.b32.xlu2 %v669_v50, %s1084_s18  ;;  %s1029_s18 = sshra.s32 %s841_s13, 4  ;;  %s1030_s18 = int_to_ptr.hbm [resolvable:$true] %s1029_s18 }
 0x227   : > { %s1031_s21 = scalar_lea.hbm %s1030_s18, 4  ;;  %p1036_p0 = scmp.lt.s32.totalorder %s1030_s18, %s1327_s8 }
 0x228   : > { %p1032_p11 = scmp.ne.s32.totalorder %s1030_s18, %s1031_s21  ;;  %p1037_p1 = scmp.lt.s32.totalorder %s1035_s25, %s1031_s21 }
 0x22a   : > { %p1033_p12 = pnand %p1032_p11, %p1169_p5  ;;  %p1038_p2 = por %p1037_p1, %p1036_p0 }
 0x22c   : > { %p1034_p13 = pneg %p1033_p12 }
 0x22e   : > { %p1039_p3 = pnand %p1038_p2, %p1034_p13 }
 0x278   : > { %v674_v54 = vpop.permute.xlu2 %673 }
 0x279   : > { %950 = vmatpush.msk.msra.mxu3 %vm364_vm4, %v674_v54 }
 0x27a   : > { %951 = vmatmul.msk.f32.vlgmr.msra.gmra.mxu3 %vm360_vm5, %v949_v53 }
 0x280   : > { %v788_v56 = vpop.permute.xlu2 %787 }
 0x281   : > { %961 = vmatpush.msk.msrb.mxu3 %vm364_vm4, %v788_v56 }
 0x282   : > { %962 = vmatmul.msk.f32.vlgmr.msrb.gmra.mxu3 %vm360_vm5, %v960_v55 }
 0x28f   : > { %v728_v59 = vpop.permute.xlu0 %727  ;;  %v758_v60 = vpop.permute.xlu1 %757 }
 0x290   : > { %955 = vmatpush.msk.msrb.mxu1 %vm364_vm4, %v728_v59  ;;  %958 = vmatpush.msk.msrb.mxu2 %vm364_vm4, %v758_v60 }
 0x291   : > { %959 = vmatmul.msk.f32.vlgmr.msrb.gmra.mxu2 %vm360_vm5, %v957_v57  ;;  %956 = vmatmul.msk.f32.vlgmr.msrb.gmra.mxu1 %vm360_vm5, %v954_v58 }
 0x297   : > { %v819_v5 = vpop.permute.xlu1 %818 }
 0x29c   : > { %v722_v62 = vpop.f32.mrf.mxu0 }
 0x2fd   : > { %v697_v61 = vpop.f32.mrf.mxu3 }
 0x2fe   : > { %v723_v63 = vadd.f32 %v722_v62, %v697_v61 }
 0x305   : > { %v811_v3 = vpop.f32.mrf.mxu3 }
 0x30e   : > { %v751_v0 = vpop.f32.mrf.mxu1 }
 0x30f   : > { %v754_v1 = vadd.f32 %v751_v0, %v723_v63 }
 0x314   : > { %v781_v2 = vpop.f32.mrf.mxu2 }
 0x315   : > { %v784_v4 = vadd.f32 %v781_v2, %v754_v1 }
 0x317   : > { %v814_v6 = vadd.f32 %v811_v3, %v784_v4 }
 0x319   : > { %v821_v7 = vadd.f32 %v819_v5, %v814_v6 }
 0x31b   : > { %v822_v8 = vmax.f32 %v821_v7, 0.0 }
 0x31d   : > { %824 = vst.msk [vmem:[%s309_s20] sm:$0xf] %vm823_vm6, %v822_v8 }
 0x31e   : > { %1042 = shalt.err (!%p1039_p3)
}
 0x31f   : > { %967 = dma.vmem_to_hbm [thread:$0]  (%p1169_p5), %s839_s12, 64, %s841_s13, %s826_s9  }
 0x320 PF: > { %p973_p4 = scmp.ge.s32.totalorder %s1077_s30, 2  ;;  %s852_s24 = sand.u32 1, %s1065_s27  }
 0x321   : > { %s853_s19 = scalar_lea.sflag [#allocation5], %s852_s24 }
 0x322   : > { %p970_p7 = pnand %p973_p4, %p1173_p6 }
 0x324   : > { %p971_p8 = pneg %p970_p7 }
 0x326   : > { %1060 = dma.done.wait (%p971_p8), %s853_s19, 64  }
 0x327   : > { %1062 = vsyncadd (%p971_p8), %s853_s19, 4294967232  ;;  %p18_p9 = scmp.ge.s32.totalorder %s1156_s11, 4   ;;  %s1330_s27 = smov %s1069_s28 }
 0x328   : > { %s1331_s28 = smov %s1073_s29  ;;  %s1332_s29 = smov %s1167_s14 }
 0x329   : > { %s1333_s30 = smov %s1156_s11  ;;  %20 = sbr.rel (!%p18_p9) target bundleno = 3 (0x3), region = 102 }
 0x32e   :  { %859 = vsyncpa [#allocation5], 1 }
 0x32f   :  { %861 = vsyncpa [#allocation5 + $0x1], 1 }

</bundles_post_ra>
